<compile_context>
chip_gen: v5e
topology: v5e:2x2
jax: 0.10.0
libtpu: 0.0.40
codegen_flags: <defaults>
</compile_context>

<pallas_src>
import jax
import jax.numpy as jnp
import numpy as np
from jax.experimental import pallas as pl
from jax.experimental.pallas import tpu as pltpu

LOG_STD_MAX = 2.0
LOG_STD_MIN = -20.0
_LOG_2PI = 1.8378770664093453   # log(2*pi)
_LOG_2 = 0.6931471805599453     # log(2)

# Row layout of the packed small-parameter buffer (one row per vector).
_ROW_B1, _ROW_B2, _ROW_BMU, _ROW_BLS, _ROW_SCALE, _ROW_SHIFT = 0, 1, 2, 3, 4, 5
_N_ROWS = 8          # padded to a full fp32 sublane tile


def _actor_kernel(xin_ref, w1_ref, w2_ref, wh_ref, pk_ref, pi_ref, logp_ref):
    h1 = w1_ref.shape[1]
    h2 = w2_ref.shape[1]
    act_dim = pi_ref.shape[1]
    in_dim = xin_ref.shape[1]
    obs_dim = in_dim - act_dim
    hstride = wh_ref.shape[1] // 2      # 128-aligned offset of the log_std head

    xin = xin_ref[...]                  # packed [obs || eps]
    eps = xin[:, obs_dim:in_dim]

    # --- MLP trunk: ReLU after every hidden layer (output_activation==activation)
    # w1 has zero rows under the eps lanes, so the packed block feeds the MXU
    # directly (no obs slice / relayout needed).
    x = jnp.dot(xin, w1_ref[...], preferred_element_type=jnp.float32)
    x = jnp.maximum(x + pk_ref[_ROW_B1:_ROW_B1 + 1, :h1], 0.0)
    x = jnp.dot(x, w2_ref[...], preferred_element_type=jnp.float32)
    x = jnp.maximum(x + pk_ref[_ROW_B2:_ROW_B2 + 1, :h2], 0.0)

    # --- fused, lane-aligned mu / log_std head: single MXU matmul ---
    head = jnp.dot(x, wh_ref[...], preferred_element_type=jnp.float32)
    mu = head[:, :act_dim] + pk_ref[_ROW_BMU:_ROW_BMU + 1, :act_dim]
    log_std = head[:, hstride:hstride + act_dim] \
        + pk_ref[_ROW_BLS:_ROW_BLS + 1, :act_dim]
    log_std = jnp.clip(log_std, LOG_STD_MIN, LOG_STD_MAX)
    std = jnp.exp(log_std)

    # --- reparameterized sample (eps == 0 -> deterministic path) ---
    pi = mu + std * eps

    # --- Normal log-prob + tanh-squash correction, summed over act dim ---
    # (pi - mu)/std == eps exactly, so no divide chain.
    nx2 = -2.0 * pi
    softplus = jnp.maximum(nx2, 0.0) + jnp.log1p(jnp.exp(-jnp.abs(nx2)))
    per_elem = (-0.5 * (eps * eps) - log_std - 0.5 * _LOG_2PI
                - 2.0 * (_LOG_2 - pi - softplus))
    # (tile_b, 1) store: 4 B/row of HBM writeback.
    logp_ref[...] = jnp.sum(per_elem, axis=-1, keepdims=True)

    # --- squash + rescale with precomputed scale/shift ---
    scale = pk_ref[_ROW_SCALE:_ROW_SCALE + 1, :act_dim]
    shift = pk_ref[_ROW_SHIFT:_ROW_SHIFT + 1, :act_dim]
    pi_ref[...] = jnp.tanh(pi) * scale + shift


def prepare_params(params, act_min, act_max):
    """Host-side packing: pad w1 for the packed [obs||eps] input, fuse the two
    heads lane-aligned, pack all small vectors into one (8, 128) buffer."""
    obs_dim, h1 = params["w1"].shape
    h2 = params["w2"].shape[1]
    act_dim = params["wmu"].shape[1]
    in_dim = obs_dim + act_dim

    # w1 with zero rows under the eps lanes of the packed input.
    w1p = jnp.zeros((in_dim, h1), jnp.float32).at[:obs_dim, :].set(
        params["w1"].astype(jnp.float32))

    # Fused head, lane-aligned: mu at lanes [0:act_dim), log_std at [128:128+act_dim).
    hstride = ((act_dim + 127) // 128) * 128
    wh = jnp.zeros((h2, 2 * hstride), jnp.float32)
    wh = wh.at[:, :act_dim].set(params["wmu"].astype(jnp.float32))
    wh = wh.at[:, hstride:hstride + act_dim].set(params["wls"].astype(jnp.float32))

    row_w = max(128, ((max(h1, h2, act_dim) + 127) // 128) * 128)
    pk = jnp.zeros((_N_ROWS, row_w), jnp.float32)
    pk = pk.at[_ROW_B1, :h1].set(params["b1"].reshape(-1))
    pk = pk.at[_ROW_B2, :h2].set(params["b2"].reshape(-1))
    pk = pk.at[_ROW_BMU, :act_dim].set(params["bmu"].reshape(-1))
    pk = pk.at[_ROW_BLS, :act_dim].set(params["bls"].reshape(-1))
    act_min = jnp.asarray(act_min, jnp.float32).reshape(-1)
    act_max = jnp.asarray(act_max, jnp.float32).reshape(-1)
    pk = pk.at[_ROW_SCALE, :act_dim].set((act_max - act_min) / 2.0)
    pk = pk.at[_ROW_SHIFT, :act_dim].set((act_max + act_min) / 2.0)

    return {"w1p": w1p, "w2": params["w2"].astype(jnp.float32), "wh": wh, "pk": pk}


def _choose_tile(batch):
    """Batch tile: multiple of 8 (fp32 sublane). Small batches run in one grid
    step (launch overhead dominates); large batches use up to 1024-row tiles but
    keep >= 2 grid steps so the parallel axis can shard across v7x's two TCs."""
    rb = ((batch + 7) // 8) * 8
    if rb <= 512:
        return rb
    half = (((rb + 1) // 2 + 7) // 8) * 8
    return min(1024, half)


@jax.jit
def actor_forward(obs, eps, prep):
    w1p, w2, wh, pk = prep["w1p"], prep["w2"], prep["wh"], prep["pk"]
    batch = obs.shape[0]
    act_dim = eps.shape[1]
    in_dim, h1 = w1p.shape
    h2 = w2.shape[1]
    hw = wh.shape[1]

    # One streamed input per grid step instead of two.
    xin = jnp.concatenate([obs.astype(jnp.float32),
                           eps.astype(jnp.float32)], axis=1)

    tile_b = _choose_tile(batch)
    pb = ((batch + tile_b - 1) // tile_b) * tile_b
    if pb != batch:
        xin = jnp.pad(xin, ((0, pb - batch), (0, 0)))

    pi_pad, logp_pad = pl.pallas_call(
        _actor_kernel,
        grid=(pb // tile_b,),
        in_specs=[
            pl.BlockSpec((tile_b, in_dim), lambda i: (i, 0)),   # streamed [obs||eps]
            pl.BlockSpec((in_dim, h1), lambda i: (0, 0)),       # weights VMEM-resident
            pl.BlockSpec((h1, h2), lambda i: (0, 0)),
            pl.BlockSpec((h2, hw), lambda i: (0, 0)),
            pl.BlockSpec(pk.shape, lambda i: (0, 0)),
        ],
        out_specs=(
            pl.BlockSpec((tile_b, act_dim), lambda i: (i, 0)),
            pl.BlockSpec((tile_b, 1), lambda i: (i, 0)),        # narrow logp block
        ),
        out_shape=(
            jax.ShapeDtypeStruct((pb, act_dim), jnp.float32),
            jax.ShapeDtypeStruct((pb, 1), jnp.float32),
        ),
        compiler_params=pltpu.CompilerParams(
            dimension_semantics=("parallel",)),
    )(xin, w1p, w2, wh, pk)

    return pi_pad[:batch], logp_pad[:batch, 0]


def init_params(key, obs_dim, hidden_sizes, act_dim):
    h1, h2 = hidden_sizes
    keys = jax.random.split(key, 8)
    scale = 0.1

    def lin(kw, kb, fan_in, fan_out):
        w = scale * jax.random.normal(kw, (fan_in, fan_out), jnp.float32)
        b = scale * jax.random.normal(kb, (1, fan_out), jnp.float32)
        return w, b

    w1, b1 = lin(keys[0], keys[1], obs_dim, h1)
    w2, b2 = lin(keys[2], keys[3], h1, h2)
    wmu, bmu = lin(keys[4], keys[5], h2, act_dim)
    wls, bls = lin(keys[6], keys[7], h2, act_dim)
    return dict(w1=w1, b1=b1, w2=w2, b2=b2,
                wmu=wmu, bmu=bmu, wls=wls, bls=bls)


def actor_reference(obs, eps, params, act_min, act_max):
    """Pure-JAX reference (matches the PyTorch forward)."""
    hp = jax.lax.Precision.HIGHEST
    h = jax.nn.relu(jnp.dot(obs, params["w1"], precision=hp) + params["b1"])
    h = jax.nn.relu(jnp.dot(h, params["w2"], precision=hp) + params["b2"])
    mu = jnp.dot(h, params["wmu"], precision=hp) + params["bmu"]
    log_std = jnp.clip(jnp.dot(h, params["wls"], precision=hp) + params["bls"],
                       LOG_STD_MIN, LOG_STD_MAX)
    std = jnp.exp(log_std)
    pi = mu + std * eps
    logp = jnp.sum(-0.5 * ((pi - mu) / std) ** 2 - log_std - 0.5 * _LOG_2PI, axis=-1)
    logp = logp - jnp.sum(2.0 * (_LOG_2 - pi - jax.nn.softplus(-2.0 * pi)), axis=-1)
    pi = jnp.tanh(pi)
    pi = (pi + 1.0) / 2.0 * (act_max - act_min) + act_min
    return pi, logp


if __name__ == "__main__":
    key = jax.random.PRNGKey(0)
    k_param, k_obs, k_eps = jax.random.split(key, 3)

    batch = 8
    obs_dim = 16
    hidden_sizes = (32, 32)
    act_dim = 8

    params = init_params(k_param, obs_dim, hidden_sizes, act_dim)
    obs = jax.random.normal(k_obs, (batch, obs_dim), jnp.float32)
    # stochastic path: eps ~ N(0,1); pass zeros for deterministic=True
    eps = jax.random.normal(k_eps, (batch, act_dim), jnp.float32)

    act_min = -1.0 * jnp.ones((1, act_dim), jnp.float32)
    act_max = 2.0 * jnp.ones((1, act_dim), jnp.float32)

    prep = prepare_params(params, act_min, act_max)
    pi_action, logp_pi = actor_forward(obs, eps, prep)
    jax.block_until_ready((pi_action, logp_pi))

    # correctness vs. pure-JAX reference
    pi_ref, logp_ref = actor_reference(obs, eps, params, act_min, act_max)
    np.testing.assert_allclose(np.asarray(pi_action), np.asarray(pi_ref),
                               rtol=1e-3, atol=1e-3)
    np.testing.assert_allclose(np.asarray(logp_pi), np.asarray(logp_ref),
                               rtol=1e-3, atol=1e-3)

    # sanity: shapes and action bounds
    assert pi_action.shape == (batch, act_dim)
    assert logp_pi.shape == (batch,)
    assert bool(jnp.all(pi_action >= act_min - 1e-5))
    assert bool(jnp.all(pi_action <= act_max + 1e-5))

    print("KERNEL_OK")
</pallas_src>

<mosaic_0001>
module attributes {stable_mosaic.version = 11 : i64} {
  func.func @_actor_kernel(%arg0: i32, %arg1: memref<8x24xf32, #tpu.memory_space<vmem>>, %arg2: memref<24x32xf32, #tpu.memory_space<vmem>>, %arg3: memref<32x32xf32, #tpu.memory_space<vmem>>, %arg4: memref<32x256xf32, #tpu.memory_space<vmem>>, %arg5: memref<8x128xf32, #tpu.memory_space<vmem>>, %arg6: memref<8x8xf32, #tpu.memory_space<vmem>>, %arg7: memref<8x1xf32, #tpu.memory_space<vmem>>) attributes {dimension_semantics = [#tpu.dimension_semantics<parallel>], iteration_bounds = array<i64: 1>, scalar_prefetch = 0 : i64, scratch_operands = 0 : i64, tpu.core_type = #tpu.core_type<tc>, window_params = [{transform_indices = @transform_0, window_bounds = array<i64: 8, 24>}, {pipeline_mode = #tpu.pipeline_mode<synchronous>, transform_indices = @transform_1, window_bounds = array<i64: 24, 32>}, {pipeline_mode = #tpu.pipeline_mode<synchronous>, transform_indices = @transform_2, window_bounds = array<i64: 32, 32>}, {pipeline_mode = #tpu.pipeline_mode<synchronous>, transform_indices = @transform_3, window_bounds = array<i64: 32, 256>}, {pipeline_mode = #tpu.pipeline_mode<synchronous>, transform_indices = @transform_4, window_bounds = array<i64: 8, 128>}, {transform_indices = @transform_5, window_bounds = array<i64: 8, 8>}, {transform_indices = @transform_6, window_bounds = array<i64: 8, 1>}]} {
    %c0 = arith.constant 0 : index
    %c0_0 = arith.constant 0 : index
    %0 = vector.load %arg1[%c0, %c0_0] : memref<8x24xf32, #tpu.memory_space<vmem>>, vector<8x24xf32>
    %1 = vector.extract_strided_slice %0 {offsets = [0, 16], sizes = [8, 8], strides = [1, 1]} : vector<8x24xf32> to vector<8x8xf32>
    %c0_1 = arith.constant 0 : index
    %c0_2 = arith.constant 0 : index
    %2 = vector.load %arg2[%c0_1, %c0_2] : memref<24x32xf32, #tpu.memory_space<vmem>>, vector<24x32xf32>
    %cst = arith.constant dense<0.000000e+00> : vector<8x32xf32>
    %3 = tpu.matmul %0, %2, %cst {dimension_numbers = #tpu.dot_dimension_numbers<[1], [0], [0], [1], [0, 0, 1, 1], [], []>} : vector<8x24xf32>, vector<24x32xf32>, vector<8x32xf32> -> vector<8x32xf32>
    %c0_3 = arith.constant 0 : index
    %c0_4 = arith.constant 0 : index
    %4 = vector.load %arg5[%c0_3, %c0_4] : memref<8x128xf32, #tpu.memory_space<vmem>>, vector<1x32xf32>
    %5 = vector.broadcast %4 : vector<1x32xf32> to vector<8x32xf32>
    %6 = arith.addf %3, %5 : vector<8x32xf32>
    %cst_5 = arith.constant 0.000000e+00 : f32
    %7 = vector.broadcast %cst_5 : f32 to vector<8x32xf32>
    %8 = arith.maximumf %6, %7 : vector<8x32xf32>
    %c0_6 = arith.constant 0 : index
    %c0_7 = arith.constant 0 : index
    %9 = vector.load %arg3[%c0_6, %c0_7] : memref<32x32xf32, #tpu.memory_space<vmem>>, vector<32x32xf32>
    %cst_8 = arith.constant dense<0.000000e+00> : vector<8x32xf32>
    %10 = tpu.matmul %8, %9, %cst_8 {dimension_numbers = #tpu.dot_dimension_numbers<[1], [0], [0], [1], [0, 0, 1, 1], [], []>} : vector<8x32xf32>, vector<32x32xf32>, vector<8x32xf32> -> vector<8x32xf32>
    %c1 = arith.constant 1 : index
    %c0_9 = arith.constant 0 : index
    %11 = vector.load %arg5[%c1, %c0_9] : memref<8x128xf32, #tpu.memory_space<vmem>>, vector<1x32xf32>
    %12 = vector.broadcast %11 : vector<1x32xf32> to vector<8x32xf32>
    %13 = arith.addf %10, %12 : vector<8x32xf32>
    %cst_10 = arith.constant 0.000000e+00 : f32
    %14 = vector.broadcast %cst_10 : f32 to vector<8x32xf32>
    %15 = arith.maximumf %13, %14 : vector<8x32xf32>
    %c0_11 = arith.constant 0 : index
    %c0_12 = arith.constant 0 : index
    %16 = vector.load %arg4[%c0_11, %c0_12] : memref<32x256xf32, #tpu.memory_space<vmem>>, vector<32x256xf32>
    %cst_13 = arith.constant dense<0.000000e+00> : vector<8x256xf32>
    %17 = tpu.matmul %15, %16, %cst_13 {dimension_numbers = #tpu.dot_dimension_numbers<[1], [0], [0], [1], [0, 0, 1, 1], [], []>} : vector<8x32xf32>, vector<32x256xf32>, vector<8x256xf32> -> vector<8x256xf32>
    %18 = vector.extract_strided_slice %17 {offsets = [0, 0], sizes = [8, 8], strides = [1, 1]} : vector<8x256xf32> to vector<8x8xf32>
    %c2 = arith.constant 2 : index
    %c0_14 = arith.constant 0 : index
    %19 = vector.load %arg5[%c2, %c0_14] : memref<8x128xf32, #tpu.memory_space<vmem>>, vector<1x8xf32>
    %20 = vector.broadcast %19 : vector<1x8xf32> to vector<8x8xf32>
    %21 = arith.addf %18, %20 : vector<8x8xf32>
    %22 = vector.extract_strided_slice %17 {offsets = [0, 128], sizes = [8, 8], strides = [1, 1]} : vector<8x256xf32> to vector<8x8xf32>
    %c3 = arith.constant 3 : index
    %c0_15 = arith.constant 0 : index
    %23 = vector.load %arg5[%c3, %c0_15] : memref<8x128xf32, #tpu.memory_space<vmem>>, vector<1x8xf32>
    %24 = vector.broadcast %23 : vector<1x8xf32> to vector<8x8xf32>
    %25 = arith.addf %22, %24 : vector<8x8xf32>
    %cst_16 = arith.constant -2.000000e+01 : f32
    %cst_17 = arith.constant 2.000000e+00 : f32
    %26 = vector.broadcast %cst_16 : f32 to vector<8x8xf32>
    %27 = arith.maximumf %26, %25 : vector<8x8xf32>
    %28 = vector.broadcast %cst_17 : f32 to vector<8x8xf32>
    %29 = arith.minimumf %28, %27 : vector<8x8xf32>
    %30 = math.exp %29 : vector<8x8xf32>
    %31 = arith.mulf %30, %1 : vector<8x8xf32>
    %32 = arith.addf %21, %31 : vector<8x8xf32>
    %cst_18 = arith.constant -2.000000e+00 : f32
    %33 = vector.broadcast %cst_18 : f32 to vector<8x8xf32>
    %34 = arith.mulf %33, %32 : vector<8x8xf32>
    %cst_19 = arith.constant 0.000000e+00 : f32
    %35 = vector.broadcast %cst_19 : f32 to vector<8x8xf32>
    %36 = arith.maximumf %34, %35 : vector<8x8xf32>
    %37 = math.absf %34 : vector<8x8xf32>
    %cst_20 = arith.constant 0.000000e+00 : f32
    %38 = vector.broadcast %cst_20 : f32 to vector<8x8xf32>
    %39 = arith.subf %38, %37 : vector<8x8xf32>
    %40 = math.exp %39 : vector<8x8xf32>
    %41 = math.log1p %40 : vector<8x8xf32>
    %42 = arith.addf %36, %41 : vector<8x8xf32>
    %43 = arith.mulf %1, %1 : vector<8x8xf32>
    %cst_21 = arith.constant -5.000000e-01 : f32
    %44 = vector.broadcast %cst_21 : f32 to vector<8x8xf32>
    %45 = arith.mulf %44, %43 : vector<8x8xf32>
    %46 = arith.subf %45, %29 : vector<8x8xf32>
    %cst_22 = arith.constant 0.918938517 : f32
    %47 = vector.broadcast %cst_22 : f32 to vector<8x8xf32>
    %48 = arith.subf %46, %47 : vector<8x8xf32>
    %cst_23 = arith.constant 0.693147182 : f32
    %49 = vector.broadcast %cst_23 : f32 to vector<8x8xf32>
    %50 = arith.subf %49, %32 : vector<8x8xf32>
    %51 = arith.subf %50, %42 : vector<8x8xf32>
    %cst_24 = arith.constant 2.000000e+00 : f32
    %52 = vector.broadcast %cst_24 : f32 to vector<8x8xf32>
    %53 = arith.mulf %52, %51 : vector<8x8xf32>
    %54 = arith.subf %48, %53 : vector<8x8xf32>
    %cst_25 = arith.constant dense<0.000000e+00> : vector<8xf32>
    %55 = vector.multi_reduction <add>, %54, %cst_25 [1] : vector<8x8xf32> to vector<8xf32>
    %56 = vector.shape_cast %55 : vector<8xf32> to vector<8x1xf32>
    %c0_26 = arith.constant 0 : index
    %c0_27 = arith.constant 0 : index
    %57 = vector.load %arg7[%c0_26, %c0_27] : memref<8x1xf32, #tpu.memory_space<vmem>>, vector<8x1xf32>
    tpu.vector_store %arg7[%c0_26, %c0_27], %56 {strides = array<i32>} : memref<8x1xf32, #tpu.memory_space<vmem>>, vector<8x1xf32>,
    %c4 = arith.constant 4 : index
    %c0_28 = arith.constant 0 : index
    %58 = vector.load %arg5[%c4, %c0_28] : memref<8x128xf32, #tpu.memory_space<vmem>>, vector<1x8xf32>
    %c5 = arith.constant 5 : index
    %c0_29 = arith.constant 0 : index
    %59 = vector.load %arg5[%c5, %c0_29] : memref<8x128xf32, #tpu.memory_space<vmem>>, vector<1x8xf32>
    %60 = math.tanh %32 : vector<8x8xf32>
    %61 = vector.broadcast %58 : vector<1x8xf32> to vector<8x8xf32>
    %62 = arith.mulf %60, %61 : vector<8x8xf32>
    %63 = vector.broadcast %59 : vector<1x8xf32> to vector<8x8xf32>
    %64 = arith.addf %62, %63 : vector<8x8xf32>
    %c0_30 = arith.constant 0 : index
    %c0_31 = arith.constant 0 : index
    %65 = vector.load %arg6[%c0_30, %c0_31] : memref<8x8xf32, #tpu.memory_space<vmem>>, vector<8x8xf32>
    tpu.vector_store %arg6[%c0_30, %c0_31], %64 {strides = array<i32>} : memref<8x8xf32, #tpu.memory_space<vmem>>, vector<8x8xf32>,
    return
  }
  func.func @transform_0(%arg0: i32) -> (i32, i32) {
    %c0_i32 = arith.constant 0 : i32
    %c0_i32_0 = arith.constant 0 : i32
    return %arg0, %c0_i32 : i32, i32
  }
  func.func @transform_1(%arg0: i32) -> (i32, i32) {
    %c0_i32 = arith.constant 0 : i32
    %c0_i32_0 = arith.constant 0 : i32
    %c0_i32_1 = arith.constant 0 : i32
    return %c0_i32, %c0_i32_0 : i32, i32
  }
  func.func @transform_2(%arg0: i32) -> (i32, i32) {
    %c0_i32 = arith.constant 0 : i32
    %c0_i32_0 = arith.constant 0 : i32
    %c0_i32_1 = arith.constant 0 : i32
    return %c0_i32, %c0_i32_0 : i32, i32
  }
  func.func @transform_3(%arg0: i32) -> (i32, i32) {
    %c0_i32 = arith.constant 0 : i32
    %c0_i32_0 = arith.constant 0 : i32
    %c0_i32_1 = arith.constant 0 : i32
    return %c0_i32, %c0_i32_0 : i32, i32
  }
  func.func @transform_4(%arg0: i32) -> (i32, i32) {
    %c0_i32 = arith.constant 0 : i32
    %c0_i32_0 = arith.constant 0 : i32
    %c0_i32_1 = arith.constant 0 : i32
    return %c0_i32, %c0_i32_0 : i32, i32
  }
  func.func @transform_5(%arg0: i32) -> (i32, i32) {
    %c0_i32 = arith.constant 0 : i32
    %c0_i32_0 = arith.constant 0 : i32
    return %arg0, %c0_i32 : i32, i32
  }
  func.func @transform_6(%arg0: i32) -> (i32, i32) {
    %c0_i32 = arith.constant 0 : i32
    %c0_i32_0 = arith.constant 0 : i32
    return %arg0, %c0_i32 : i32, i32
  }
}

</mosaic_0001>

<bundles_post_ra>
// kernel: actor_forward.1
= control target key start
LH: loop header
LB: loop body
LE: loop exit
PB: predicated region body
PF: predicated region fallthrough
CT: control target
= control target key end

     0   :  { %12 = vsyncpa [#allocation3], 0  ;;  %s485_s0 = inlined_call_operand.vmem [shape: f32[8,24], index: 0, kind: input, shape index: {}]   ;;  %s486_s1 = inlined_call_operand.vmem [shape: f32[24,32], index: 1, kind: input, shape index: {}]   ;;  %s487_s2 = inlined_call_operand.hbm [shape: f32[32,32], index: 2, kind: input, shape index: {}]   ;;  %s488_s3 = inlined_call_operand.hbm [shape: f32[32,256], index: 3, kind: input, shape index: {}]   ;;  %s489_s4 = inlined_call_operand.hbm [shape: f32[8,128], index: 4, kind: input, shape index: {}]   ;;  %s490_s5 = inlined_call_operand.hbm [shape: f32[8,8], index: 5, kind: output, shape index: {0}]   ;;  %s491_s6 = inlined_call_operand.vmem [shape: f32[8,1], index: 6, kind: output, shape index: {1}]  }
   0x1   :  { %13 = vsyncpa [#allocation6], 0  ;;  %s36_s23 = sshll.u32 %s488_s3, 4  ;;  %s37_s23 = int_to_ptr.hbm [resolvable:$true] %s36_s23 }
   0x2   :  { %14 = vsyncpa [#allocation4], 0  ;;  %s398_s24 = smov [#allocation5]   ;;  %s23_s28 = sshll.u32 %s487_s2, 4  ;;  %s24_s28 = int_to_ptr.hbm [resolvable:$true] %s23_s28 }
   0x3   :  { %s38_s25 = sshll.u32 %s398_s24, 4  ;;  %s399_s29 = smov 256   ;;  %s39_s25 = int_to_ptr.vmem [resolvable:$true] %s38_s25 }
   0x4   :  { %s400_s30 = smov 16   ;;  %s401_s7 = smov [#allocation2]  }
   0x5   :  { %44 = dma.hbm_to_vmem [thread:$0]  %s37_s23, 1024, %s39_s25, [#allocation6], %s399_s29, %s399_s29, %s400_s30  }
   0x6   :  { %s25_s8 = sshll.u32 %s401_s7, 4  ;;  %s402_s9 = smov 128   ;;  %s26_s8 = int_to_ptr.vmem [resolvable:$true] %s25_s8 }
   0x7   :  { %s403_s10 = smov 8   ;;  %s50_s12 = sshll.u32 %s489_s4, 4  ;;  %s51_s12 = int_to_ptr.hbm [resolvable:$true] %s50_s12 }
   0x8   :  { %31 = dma.hbm_to_vmem [thread:$0]  %s24_s28, 512, %s26_s8, [#allocation3], %s402_s9, %s402_s9, %s403_s10  }
   0x9   :  { %s404_s13 = smov [#allocation7]  }
   0xa   :  { %s52_s14 = sshll.u32 %s404_s13, 4  ;;  %s53_s14 = int_to_ptr.vmem [resolvable:$true] %s52_s14 }
   0xb   :  { %55 = dma.hbm_to_vmem [thread:$0]  %s51_s12, 128, %s53_s14, [#allocation6]  }
   0xc   :  { %392 = dma.done.wait [#allocation3], 512  }
   0xd   :  { %393 = vsyncadd [#allocation3], 4294966784 }
   0xe   :  { %394 = dma.done.wait [#allocation6], 1152  }
   0xf   :  { %395 = vsyncadd [#allocation6], 4294966144  ;;  %v71_v0 = vld [vmem:[%s486_s1 + $0x10] sm:$0xff]  ;;  %v70_v1 = vld [vmem:[%s486_s1 + $0x8] sm:$0xff]  ;;  %vm74_vm0 = vcmask 195584   ;;  %vm105_vm1 = vcmask 261120  }
  0x10   :  { %91 = vmatpush.msra.mxu0 %v71_v0  ;;  %v69_v2 = vld [vmem:[%s486_s1] sm:$0xff]  ;;  %v102_v3 = vld [vmem:[#allocation2 + $0x18] sm:$0xff]  ;;  %v101_v5 = vld [vmem:[#allocation2 + $0x10] sm:$0xff]  ;;  %vm232_vm2 = vcmask 64512   ;;  %s406_s1 = smov [#allocation8]   ;;  %s253_s24 = sshll.u32 %s490_s5, 4  ;;  %s254_s24 = int_to_ptr.hbm [resolvable:$true] %s253_s24 }
  0x11   :  { %v464_v4 = vld [vmem:[%s485_s0] sm:$0xff]  ;;  %121 = vmatpush.msra.mxu1 %v102_v3  ;;  %v100_v6 = vld [vmem:[#allocation2 + $0x8] sm:$0xff]  ;;  %v136_v8 = vld [vmem:[#allocation5 + $0x30] sm:$0xff]  ;;  %s405_s0 = smov 112   ;;  %s251_s21 = sshll.u32 %s406_s1, 4  ;;  %vm236_vm4 = vcmask 7168   ;;  %s252_s21 = int_to_ptr.vmem [resolvable:$true] %s251_s21 }
  0x12   :  { %92 = vmatpush.msra.mxu0 %v70_v1  ;;  %v99_v7 = vld [vmem:[#allocation2] sm:$0xff]  ;;  %v137_v9 = vld [vmem:[#allocation5 + $0x38] sm:$0xff]  ;;  %153 = vmatpush.msra.mxu2 %v136_v8  ;;  %v135_v15 = vld [vmem:[#allocation5 + $0x28] sm:$0xff]  ;;  %v212_v60 = vmul.f32 %v464_v4, %v464_v4 }
  0x13   :  { %122 = vmatpush.msra.mxu1 %v101_v5  ;;  %173 = vmatpush.msra.mxu3 %v137_v9  ;;  %v282_v10 = vld [vmem:[#allocation7] ss:$0 sm:$0xff]  ;;  %v132_v16 = vld [vmem:[#allocation5 + $0x10] sm:$0xff]  ;;  %v133_v17 = vld [vmem:[#allocation5 + $0x18] sm:$0xff] }
  0x14   :  { %93 = vmatpush.msra.mxu0 %v69_v2  ;;  %191 = vrot.lane.b32.xlu0 %v464_v4, %s405_s0  ;;  %v134_v14 = vld [vmem:[#allocation5 + $0x20] sm:$0xff]  ;;  %v131_v19 = vld [vmem:[#allocation5 + $0x8] sm:$0xff]  ;;  %v213_v61 = vmul.f32 -0.5, %v212_v60 }
  0x15   :  { %268 = vmatmul.msk.f32.vlgmr.msra.gmra.mxu0 %vm74_vm0, %v464_v4  ;;  %123 = vmatpush.msra.mxu1 %v100_v6  ;;  %v130_v18 = vld [vmem:[#allocation5] sm:$0xff] }
  0x16   :  { %154 = vmatpush.msra.mxu2 %v134_v14  ;;  %174 = vmatpush.msra.mxu3 %v135_v15  ;;  %v283_v20 = vld [vmem:[#allocation7 + $0x1] ss:$0 sm:$0xff]  ;;  %v285_v24 = vld [vmem:[#allocation7 + $0x3] ss:$0 sm:$0xff]  ;;  %v284_v30 = vld [vmem:[#allocation7 + $0x2] ss:$0 sm:$0xff] }
  0x17   :  { %124 = vmatpush.msra.mxu1 %v99_v7  ;;  %v286_v39 = vld [vmem:[#allocation7 + $0x4] ss:$0 sm:$0xff]  ;;  %v287_v41 = vld [vmem:[#allocation7 + $0x5] ss:$0 sm:$0xff] }
  0x18   :  { %155 = vmatpush.msra.mxu2 %v132_v16  ;;  %175 = vmatpush.msra.mxu3 %v133_v17 }
  0x1a   :  { %156 = vmatpush.msra.mxu2 %v130_v18  ;;  %176 = vmatpush.msra.mxu3 %v131_v19 }
  0x86   :  { %v192_v32 = vpop.permute.xlu0 %191 }
  0x92   :  { %v95_v11 = vpop.f32.mrf.mxu0 }
  0x93   :  { %v96_v12 = vadd.f32 %v282_v10, %v95_v11 }
  0x95   :  { %v98_v13 = vmax.f32 %v96_v12, 0.0 }
  0x97   :  { %269 = vmatmul.msk.f32.vlgmr.msra.gmra.mxu1 %vm105_vm1, %v98_v13 }
 0x114   :  { %v126_v21 = vpop.f32.mrf.mxu1 }
 0x115   :  { %v127_v22 = vadd.f32 %v283_v20, %v126_v21 }
 0x117   :  { %v129_v23 = vmax.f32 %v127_v22, 0.0 }
 0x119   :  { %270 = vmatmul.msk.f32.vlgmr.msra.gmra.mxu2 %vm105_vm1, %v129_v23  ;;  %271 = vmatmul.msk.f32.vlgmr.msra.gmra.mxu3 %vm105_vm1, %v129_v23 }
 0x19c   :  { %v178_v25 = vpop.f32.mrf.mxu3  ;;  %v158_v31 = vpop.f32.mrf.mxu2 }
 0x19d   :  { %v186_v26 = vadd.f32 %v285_v24, %v178_v25  ;;  %v183_v34 = vadd.f32 %v284_v30, %v158_v31 }
 0x19f   :  { %v187_v27 = vmax.f32 %v186_v26, -20.0 }
 0x1a1   :  { %v188_v28 = vmin.f32 %v187_v27, 2.0 }
 0x1a3   :  { %215 = vrot.lane.b32.xlu0 %v188_v28, %s400_s30  ;;  %v189_v29 = vmul.f32 1.442695, %v188_v28 }
 0x1a5   :  { %288 = vpow2.f32 %v189_v29 }
 0x1ab   :  { %v289_v33 = vpop.eup %288 }
 0x1ac   :  { %v194_v35 = vmul.f32 %v289_v33, %v192_v32 }
 0x1ae   :  { %v195_v36 = vadd.f32 %v194_v35, %v183_v34 }
 0x1b0   :  { %290 = vtanh.f32 %v195_v36  ;;  %v196_v37 = vmul.f32 -2.0, %v195_v36  ;;  %v220_v57 = vsub.f32 0.6931472, %v195_v36 }
 0x1b2   :  { %v198_v38 = vand.u32 2147483647, %v196_v37  ;;  %v197_v54 = vmax.f32 %v196_v37, 0.0 }
 0x1b4   :  { %v199_v40 = vsub.f32 0.0, %v198_v38 }
 0x1b6   :  { %v291_v42 = vpop.eup %290  ;;  %v200_v43 = vmul.f32 1.442695, %v199_v40 }
 0x1b7   :  { %v242_v44 = vmul.f32 %v291_v42, %v286_v39 }
 0x1b8   :  { %292 = vpow2.f32 %v200_v43 }
 0x1b9   :  { %v244_v45 = vadd.f32 %v287_v41, %v242_v44 }
 0x1bb   :  { %245 = vst.msk [vmem:[#allocation8] sm:$0xff] %vm232_vm2, %v244_v45 }
 0x1bc   :  { %256 = dma.vmem_to_hbm [thread:$0]  %s252_s21, 128, %s254_s24, [#allocation4]  }
 0x1be   :  { %v293_v46 = vpop.eup %292 }
 0x1bf   :  { %v202_v47 = vadd.f32 1.0, %v293_v46  ;;  %v205_v48 = vmul.f32 -0.5, %v293_v46  ;;  %v208_v50 = vand.u32 2147483647, %v293_v46 }
 0x1c1   :  { %294 = vlog2.f32 %v202_v47  ;;  %v206_v49 = vadd.f32 1.0, %v205_v48  ;;  %vm209_vm3 = vcmp.lt.f32.partialorder %v208_v50, 0.0004427343 }
 0x1c3   :  { %v207_v53 = vmul.f32 %v293_v46, %v206_v49 }
 0x1c7   :  { %v295_v51 = vpop.eup %294 }
 0x1c8   :  { %v204_v52 = vmul.f32 0.6931472, %v295_v51 }
 0x1ca   :  { %v210_v55 = vsel %vm209_vm3, %v207_v53, %v204_v52 }
 0x1cb   :  { %v211_v56 = vadd.f32 %v210_v55, %v197_v54 }
 0x1cd   :  { %v221_v58 = vsub.f32 %v220_v57, %v211_v56 }
 0x1cf   :  { %v222_v59 = vmul.f32 2.0, %v221_v58 }
 0x1d1   :  { %224 = vrot.lane.b32.xlu1 %v222_v59, %s400_s30 }
 0x215   :  { %v216_v62 = vpop.permute.xlu0 %215 }
 0x216   :  { %v218_v63 = vsub.f32 %v213_v61, %v216_v62 }
 0x218   :  { %v272_v0 = vadd.f32 -0.9189385, %v218_v63 }
 0x243   :  { %v225_v1 = vpop.permute.xlu1 %224 }
 0x244   :  { %v227_v2 = vsub.f32 %v272_v0, %v225_v1 }
 0x246   :  { %229 = vrot.lane.b32.xlu1 %v227_v2, %s405_s0 }
 0x2b8   :  { %v230_v3 = vpop.permute.xlu1 %229 }
 0x2b9   :  { %v233_v4 = vsel %vm232_vm2, %v230_v3, 0.0 }
 0x2ba   :  { %234 = vadd.xlane.f32.xlu2 %v233_v4 }
 0x32d   :  { %v235_v5 = vpop.xlane.xlu2 %234 }
 0x32e   :  { %237 = vst.msk [vmem:[%s491_s6] sm:$0xff] %vm236_vm4, %v235_v5 }
 0x32f   :  { %396 = dma.done.wait [#allocation4], 128  }
 0x330   :  { %397 = vsyncadd [#allocation4], 4294967168 }
 0x331   :  { %265 = vsyncpa [#allocation3], 1 }
 0x332   :  { %266 = vsyncpa [#allocation6], 1 }
 0x333   :  { %267 = vsyncpa [#allocation4], 1 }

</bundles_post_ra>
